<compile_context>
chip_gen: v6e
topology: v6e:2x2x1
jax: 0.10.0
libtpu: 0.0.40
codegen_flags: <defaults>
</compile_context>

<pallas_src>
import functools

import jax
import jax.numpy as jnp
from jax.experimental import pallas as pl
from jax.experimental.pallas import tpu as pltpu


def _round_up(x, m):
    return (x + m - 1) // m * m


# ---------------------------------------------------------------------------
# Kernel: fused 3-layer MLP, weights resident in VMEM, batch tiled on the grid.
# ---------------------------------------------------------------------------
def _disc_kernel(x_ref, w1_ref, w2_ref, w3_ref, vecs_ref, out_ref, *, hp, dp):
    x = x_ref[...]                       # (TB, Dk) f32; cols = [x, t, c, 0-pad]

    vecs = vecs_ref[...]                 # (8, W) packed small f32 vectors
    base = vecs[0:1, :hp]                # mt[0] + mc[0] + b1   (1, Hp)
    b2 = vecs[1:2, :hp]                  # (1, Hp)
    b3 = vecs[2:3, :dp]                  # (1, Dp)

    # Layer 1: relu([x, temb, cemb] @ W1^T + b1).  Embedding lookups are folded:
    # W1 carries dt/dc rows matched to the t/c columns of x, so a single bf16
    # MXU matmul + f32 bias/ReLU covers the whole concatenated input.
    h1 = jnp.dot(x.astype(jnp.bfloat16), w1_ref[...],
                 preferred_element_type=jnp.float32)
    h1 = jnp.maximum(h1 + base, 0.0)

    # Layer 2: relu(h1 @ W2^T + b2)
    h2 = jnp.dot(h1.astype(jnp.bfloat16), w2_ref[...],
                 preferred_element_type=jnp.float32)
    h2 = jnp.maximum(h2 + b2, 0.0)

    # Layer 3: h2 @ W3^T + b3   (lane-dense padded output; wrapper slices it)
    out_ref[...] = jnp.dot(h2.astype(jnp.bfloat16), w3_ref[...],
                           preferred_element_type=jnp.float32) + b3


# ---------------------------------------------------------------------------
# Wrapper
# ---------------------------------------------------------------------------
def diffusion_discriminator_forward(x, t, c, kp):
    """x: (B, input_dim) f32, t: (B,) in {0,1}, c: (B,) in {0,1}, kp: packed params."""
    D = kp["input_dim"]
    Dk = kp["w1"].shape[0]               # padded layer-1 K dim (D + 2 -> mult. of 128)
    Hp = kp["w2"].shape[0]               # padded hidden dim  (multiple of 128)
    Dp = kp["w3"].shape[1]               # padded output dim  (multiple of 128)
    W = kp["vecs"].shape[1]
    B = x.shape[0]

    # Batch tile: at least 2 grid steps (so v7x's two TensorCores both get work),
    # sublane-aligned, capped at 512 for large batches.
    TB = min(512, max(8, _round_up(-(-B // 2), 8)))
    Bp = max(_round_up(B, TB), 2 * TB)
    grid = (Bp // TB,)

    # Fold t/c into two extra activation columns (exact 0/1 floats); zero-pad the
    # rest of the lane dim and the batch dim.
    xa = jnp.zeros((Bp, Dk), jnp.float32)
    xa = xa.at[:B, :D].set(x.astype(jnp.float32))
    xa = xa.at[:B, D].set(t.astype(jnp.float32))
    xa = xa.at[:B, D + 1].set(c.astype(jnp.float32))

    kernel = functools.partial(_disc_kernel, hp=Hp, dp=Dp)

    # Advisory cost estimate (helps XLA schedule around the custom call).
    weight_bytes = (Dk * Hp + Hp * Hp + Hp * Dp) * 2
    flops = 2 * Bp * (Dk * Hp + Hp * Hp + Hp * Dp)
    bytes_accessed = Bp * Dk * 4 + Bp * Dp * 4 + weight_bytes + 8 * W * 4
    cost = pl.CostEstimate(flops=flops, transcendentals=0,
                           bytes_accessed=bytes_accessed)

    # VMEM budget: streamed x/out double-buffered, bf16 weights single-buffered,
    # plus f32 h1/h2 intermediates.  Leave ~25% headroom, clamp to 128 MiB.
    vmem_bytes = (2 * TB * Dk * 4 + 2 * TB * Dp * 4 + weight_bytes
                  + 8 * W * 4 + 4 * TB * Hp * 4)
    vmem_limit = int(min(max(vmem_bytes * 5 // 4, 32 * 1024 * 1024),
                         128 * 1024 * 1024))

    out = pl.pallas_call(
        kernel,
        out_shape=jax.ShapeDtypeStruct((Bp, Dp), jnp.float32),
        grid=grid,
        in_specs=[
            # Streamed activation tile (double-buffered by default).
            pl.BlockSpec((TB, Dk), lambda i: (i, 0)),
            # Grid-resident weights: constant index_map, single-buffered.
            pl.BlockSpec((Dk, Hp), lambda i: (0, 0),
                         pipeline_mode=pl.Buffered(1)),
            pl.BlockSpec((Hp, Hp), lambda i: (0, 0),
                         pipeline_mode=pl.Buffered(1)),
            pl.BlockSpec((Hp, Dp), lambda i: (0, 0),
                         pipeline_mode=pl.Buffered(1)),
            pl.BlockSpec((8, W), lambda i: (0, 0),
                         pipeline_mode=pl.Buffered(1)),
        ],
        out_specs=pl.BlockSpec((TB, Dp), lambda i: (i, 0)),
        compiler_params=pltpu.CompilerParams(
            dimension_semantics=("parallel",),
            vmem_limit_bytes=vmem_limit),
        cost_estimate=cost,
    )(xa, kp["w1"], kp["w2"], kp["w3"], kp["vecs"])

    return out[:B, :D]


# ---------------------------------------------------------------------------
# Parameters (PyTorch-equivalent raw params + kernel-ready packing)
# ---------------------------------------------------------------------------
def _spectral_normalize(w):
    s = jnp.linalg.svd(w, compute_uv=False)
    return w / s[0]


def make_params(key, input_dim, hidden_dim):
    """Raw parameters matching the PyTorch module shapes (weights as (out, in))."""
    mlp_in = input_dim + 2 * hidden_dim
    ks = jax.random.split(key, 8)

    time_embed = jax.random.normal(ks[0], (2, hidden_dim), jnp.float32)
    cond_embed = jax.random.normal(ks[1], (2, hidden_dim), jnp.float32)

    def linear(kw, kb, fan_in, fan_out):
        bound = 1.0 / jnp.sqrt(fan_in)
        w = jax.random.uniform(kw, (fan_out, fan_in), jnp.float32, -bound, bound)
        b = jax.random.uniform(kb, (fan_out,), jnp.float32, -bound, bound)
        return w, b

    w1, b1 = linear(ks[2], ks[3], mlp_in, hidden_dim)       # (H, D+2H)
    w2, b2 = linear(ks[4], ks[5], hidden_dim, hidden_dim)   # (H, H)
    w3, b3 = linear(ks[6], ks[7], hidden_dim, input_dim)    # (D, H)

    # spectral_norm on layers 1 and 2 (exact SVD; PyTorch uses power iteration).
    w1 = _spectral_normalize(w1)
    w2 = _spectral_normalize(w2)

    return {
        "time_embed": time_embed, "cond_embed": cond_embed,
        "w1": w1, "b1": b1, "w2": w2, "b2": b2, "w3": w3, "b3": b3,
        "input_dim": input_dim, "hidden_dim": hidden_dim,
    }


def pack_params(raw):
    """Fold embedding matmuls + t/c deltas into W1, pre-transpose, pad, cast bf16."""
    D, H = raw["input_dim"], raw["hidden_dim"]
    Dk = _round_up(D + 2, 128)          # layer-1 K dim: x cols + t col + c col
    Hp = _round_up(H, 128)
    Dp = _round_up(D, 128)
    W = max(Hp, Dp)

    w1 = raw["w1"]                      # (H, D+2H)
    w1x = w1[:, :D].T                   # (D, H)
    w1t = w1[:, D:D + H].T              # (H, H)
    w1c = w1[:, D + H:].T               # (H, H)

    # Fold the two embedding matmuls into 2-row tables, then into bias + deltas.
    mt = raw["time_embed"] @ w1t        # (2, H)
    mc = raw["cond_embed"] @ w1c        # (2, H)
    base = mt[0] + mc[0] + raw["b1"]    # (H,)
    dt = mt[1] - mt[0]                  # (H,)  contribution when t == 1
    dc = mc[1] - mc[0]                  # (H,)  contribution when c == 1

    # Layer-1 weight with the t/c delta rows folded in (rows D and D+1).
    w1a = jnp.zeros((Dk, Hp), jnp.float32)
    w1a = w1a.at[:D, :H].set(w1x)
    w1a = w1a.at[D, :H].set(dt)
    w1a = w1a.at[D + 1, :H].set(dc)

    w2p = jnp.zeros((Hp, Hp), jnp.float32).at[:H, :H].set(raw["w2"].T)
    w3p = jnp.zeros((Hp, Dp), jnp.float32).at[:H, :D].set(raw["w3"].T)

    # Pack all small f32 vectors into a single (8, W) tile.
    vecs = jnp.zeros((8, W), jnp.float32)
    vecs = vecs.at[0, :H].set(base)
    vecs = vecs.at[1, :H].set(raw["b2"])
    vecs = vecs.at[2, :D].set(raw["b3"])

    return {"w1": w1a.astype(jnp.bfloat16),
            "w2": w2p.astype(jnp.bfloat16),
            "w3": w3p.astype(jnp.bfloat16),
            "vecs": vecs,
            "input_dim": D, "hidden_dim": H}


# ---------------------------------------------------------------------------
# Pure-JAX reference (mirrors the PyTorch forward exactly, from raw f32 params)
# ---------------------------------------------------------------------------
def reference_forward(x, t, c, raw):
    temb = raw["time_embed"][t]
    cemb = raw["cond_embed"][c]
    x_in = jnp.concatenate([x, temb, cemb], axis=-1)
    h1 = jax.nn.relu(x_in @ raw["w1"].T + raw["b1"])
    h2 = jax.nn.relu(h1 @ raw["w2"].T + raw["b2"])
    return h2 @ raw["w3"].T + raw["b3"]


# TODO(synk): compute_loss (R1 gradient penalty via autograd) is training-side and
# not part of the forward pass; it is not implemented as a kernel.

if __name__ == "__main__":
    B, input_dim, hidden_dim = 8, 16, 32

    key = jax.random.PRNGKey(0)
    kx, kt, kc, kp = jax.random.split(key, 4)

    x = jax.random.normal(kx, (B, input_dim), jnp.float32)
    t = jax.random.randint(kt, (B,), 0, 2, jnp.int32)
    c = jax.random.randint(kc, (B,), 0, 2, jnp.int32)

    raw = make_params(kp, input_dim, hidden_dim)
    packed = pack_params(raw)

    out = diffusion_discriminator_forward(x, t, c, packed)
    out = jax.block_until_ready(out)

    ref = reference_forward(x, t, c, raw)
    assert out.shape == (B, input_dim)
    # bf16 weights on the MXU (f32 accumulate) -> tolerance appropriate for bf16.
    assert jnp.allclose(out, ref, atol=2e-2, rtol=2e-2), (
        float(jnp.max(jnp.abs(out - ref))))

    print("KERNEL_OK")
</pallas_src>

<mosaic_0001>
module attributes {stable_mosaic.version = 11 : i64} {
  func.func @_disc_kernel(%arg0: i32, %arg1: memref<8x128xf32, #tpu.memory_space<vmem>>, %arg2: memref<128x128xbf16, #tpu.memory_space<vmem>>, %arg3: memref<128x128xbf16, #tpu.memory_space<vmem>>, %arg4: memref<128x128xbf16, #tpu.memory_space<vmem>>, %arg5: memref<8x128xf32, #tpu.memory_space<vmem>>, %arg6: memref<8x128xf32, #tpu.memory_space<vmem>>) attributes {dimension_semantics = [#tpu.dimension_semantics<parallel>], iteration_bounds = array<i64: 2>, scalar_prefetch = 0 : i64, scratch_operands = 0 : i64, tpu.core_type = #tpu.core_type<tc>, window_params = [{transform_indices = @transform_0, window_bounds = array<i64: 8, 128>}, {pipeline_mode = #tpu.pipeline_mode<synchronous>, transform_indices = @transform_1, window_bounds = array<i64: 128, 128>}, {pipeline_mode = #tpu.pipeline_mode<synchronous>, transform_indices = @transform_2, window_bounds = array<i64: 128, 128>}, {pipeline_mode = #tpu.pipeline_mode<synchronous>, transform_indices = @transform_3, window_bounds = array<i64: 128, 128>}, {pipeline_mode = #tpu.pipeline_mode<synchronous>, transform_indices = @transform_4, window_bounds = array<i64: 8, 128>}, {transform_indices = @transform_5, window_bounds = array<i64: 8, 128>}]} {
    %c0 = arith.constant 0 : index
    %c0_0 = arith.constant 0 : index
    %0 = vector.load %arg1[%c0, %c0_0] : memref<8x128xf32, #tpu.memory_space<vmem>>, vector<8x128xf32>
    %c0_1 = arith.constant 0 : index
    %c0_2 = arith.constant 0 : index
    %1 = vector.load %arg5[%c0_1, %c0_2] : memref<8x128xf32, #tpu.memory_space<vmem>>, vector<8x128xf32>
    %2 = vector.extract_strided_slice %1 {offsets = [0, 0], sizes = [1, 128], strides = [1, 1]} : vector<8x128xf32> to vector<1x128xf32>
    %3 = vector.extract_strided_slice %1 {offsets = [1, 0], sizes = [1, 128], strides = [1, 1]} : vector<8x128xf32> to vector<1x128xf32>
    %4 = vector.extract_strided_slice %1 {offsets = [2, 0], sizes = [1, 128], strides = [1, 1]} : vector<8x128xf32> to vector<1x128xf32>
    %5 = arith.truncf %0 : vector<8x128xf32> to vector<8x128xbf16>
    %c0_3 = arith.constant 0 : index
    %c0_4 = arith.constant 0 : index
    %6 = vector.load %arg2[%c0_3, %c0_4] : memref<128x128xbf16, #tpu.memory_space<vmem>>, vector<128x128xbf16>
    %cst = arith.constant dense<0.000000e+00> : vector<8x128xf32>
    %7 = tpu.matmul %5, %6, %cst {dimension_numbers = #tpu.dot_dimension_numbers<[1], [0], [0], [1], [0, 0, 1, 1], [], []>} : vector<8x128xbf16>, vector<128x128xbf16>, vector<8x128xf32> -> vector<8x128xf32>
    %8 = vector.broadcast %2 : vector<1x128xf32> to vector<8x128xf32>
    %9 = arith.addf %7, %8 : vector<8x128xf32>
    %cst_5 = arith.constant 0.000000e+00 : f32
    %10 = vector.broadcast %cst_5 : f32 to vector<8x128xf32>
    %11 = arith.maximumf %9, %10 : vector<8x128xf32>
    %12 = arith.truncf %11 : vector<8x128xf32> to vector<8x128xbf16>
    %c0_6 = arith.constant 0 : index
    %c0_7 = arith.constant 0 : index
    %13 = vector.load %arg3[%c0_6, %c0_7] : memref<128x128xbf16, #tpu.memory_space<vmem>>, vector<128x128xbf16>
    %cst_8 = arith.constant dense<0.000000e+00> : vector<8x128xf32>
    %14 = tpu.matmul %12, %13, %cst_8 {dimension_numbers = #tpu.dot_dimension_numbers<[1], [0], [0], [1], [0, 0, 1, 1], [], []>} : vector<8x128xbf16>, vector<128x128xbf16>, vector<8x128xf32> -> vector<8x128xf32>
    %15 = vector.broadcast %3 : vector<1x128xf32> to vector<8x128xf32>
    %16 = arith.addf %14, %15 : vector<8x128xf32>
    %cst_9 = arith.constant 0.000000e+00 : f32
    %17 = vector.broadcast %cst_9 : f32 to vector<8x128xf32>
    %18 = arith.maximumf %16, %17 : vector<8x128xf32>
    %19 = arith.truncf %18 : vector<8x128xf32> to vector<8x128xbf16>
    %c0_10 = arith.constant 0 : index
    %c0_11 = arith.constant 0 : index
    %20 = vector.load %arg4[%c0_10, %c0_11] : memref<128x128xbf16, #tpu.memory_space<vmem>>, vector<128x128xbf16>
    %cst_12 = arith.constant dense<0.000000e+00> : vector<8x128xf32>
    %21 = tpu.matmul %19, %20, %cst_12 {dimension_numbers = #tpu.dot_dimension_numbers<[1], [0], [0], [1], [0, 0, 1, 1], [], []>} : vector<8x128xbf16>, vector<128x128xbf16>, vector<8x128xf32> -> vector<8x128xf32>
    %22 = vector.broadcast %4 : vector<1x128xf32> to vector<8x128xf32>
    %23 = arith.addf %21, %22 : vector<8x128xf32>
    %c0_13 = arith.constant 0 : index
    %c0_14 = arith.constant 0 : index
    %24 = vector.load %arg6[%c0_13, %c0_14] : memref<8x128xf32, #tpu.memory_space<vmem>>, vector<8x128xf32>
    tpu.vector_store %arg6[%c0_13, %c0_14], %23 {strides = array<i32>} : memref<8x128xf32, #tpu.memory_space<vmem>>, vector<8x128xf32>,
    return
  }
  func.func @transform_0(%arg0: i32) -> (i32, i32) {
    %c0_i32 = arith.constant 0 : i32
    %c0_i32_0 = arith.constant 0 : i32
    return %arg0, %c0_i32 : i32, i32
  }
  func.func @transform_1(%arg0: i32) -> (i32, i32) {
    %c0_i32 = arith.constant 0 : i32
    %c0_i32_0 = arith.constant 0 : i32
    %c0_i32_1 = arith.constant 0 : i32
    return %c0_i32, %c0_i32_0 : i32, i32
  }
  func.func @transform_2(%arg0: i32) -> (i32, i32) {
    %c0_i32 = arith.constant 0 : i32
    %c0_i32_0 = arith.constant 0 : i32
    %c0_i32_1 = arith.constant 0 : i32
    return %c0_i32, %c0_i32_0 : i32, i32
  }
  func.func @transform_3(%arg0: i32) -> (i32, i32) {
    %c0_i32 = arith.constant 0 : i32
    %c0_i32_0 = arith.constant 0 : i32
    %c0_i32_1 = arith.constant 0 : i32
    return %c0_i32, %c0_i32_0 : i32, i32
  }
  func.func @transform_4(%arg0: i32) -> (i32, i32) {
    %c0_i32 = arith.constant 0 : i32
    %c0_i32_0 = arith.constant 0 : i32
    %c0_i32_1 = arith.constant 0 : i32
    return %c0_i32, %c0_i32_0 : i32, i32
  }
  func.func @transform_5(%arg0: i32) -> (i32, i32) {
    %c0_i32 = arith.constant 0 : i32
    %c0_i32_0 = arith.constant 0 : i32
    return %arg0, %c0_i32 : i32, i32
  }
}

</mosaic_0001>

<bundles_post_ra>
// kernel: tpu_custom_call.1
= control target key start
LH: loop header
LB: loop body
LE: loop exit
PB: predicated region body
PF: predicated region fallthrough
CT: control target
= control target key end

     0   :  { %10 = vsyncpa [#allocation3], 0  ;;  %s1495_s0 = inlined_call_operand.hbm [shape: f32[16,128], index: 0, kind: input, shape index: {}]   ;;  %s1496_s1 = inlined_call_operand.hbm [shape: bf16[128,128], index: 1, kind: input, shape index: {}]   ;;  %s1497_s2 = inlined_call_operand.hbm [shape: bf16[128,128], index: 2, kind: input, shape index: {}]   ;;  %s1498_s3 = inlined_call_operand.hbm [shape: bf16[128,128], index: 3, kind: input, shape index: {}]   ;;  %s1499_s4 = inlined_call_operand.hbm [shape: f32[8,128], index: 4, kind: input, shape index: {}]   ;;  %s1500_s5 = inlined_call_operand.hbm [shape: f32[16,128], index: 5, kind: output, shape index: {}]  }
   0x1   :  { %12 = vsyncpa [#allocation3 + $0x1], 0 }
   0x2   :  { %13 = vsyncpa [#allocation6], 0 }
   0x3   :  { %14 = vsyncpa [#allocation9], 0 }
   0x4   :  { %15 = vsyncpa [#allocation4], 0 }
   0x5   :  { %17 = vsyncpa [#allocation4 + $0x1], 0  ;;  %s1243_s18 = smov 0   ;;  %s1245_s19 = smov 0  }
   0x6   :  { %s1247_s20 = smov 0   ;;  %s1249_s21 = smov 0  }
   0x7 LB: > { %s1203_s22 = smov [#allocation5]   ;;  %s1264_s24 = sadd.s32 4294967295, %s1201_s21   ;;  %s1201_s21 = sphi %s1249_s21, %s1524_s21   ;;  %s1197_s20 = sphi %s1247_s20, %s1523_s20   ;;  %s1193_s19 = sphi %s1245_s19, %s1522_s19   ;;  %s1189_s18 = sphi %s1243_s18, %s1521_s18  }
   0x8   : > { %s176_s23 = sshll.u32 %s1203_s22, 4  ;;  %p752_p0 = scmp.ge.s32.totalorder %s1201_s21, 1  ;;  %s177_s23 = int_to_ptr.vmem [resolvable:$true] %s176_s23 }
   0x9   : > { %p1501_p1 = scmp.eq.s32.totalorder %s1264_s24, 0  ;;  %p164_p2 = scmp.lt.s32.totalorder %s1201_s21, 3 }
   0xa   : > { %s1204_s26 = smov [#allocation8]   ;;  %s1205_s29 = smov [#allocation7]  }
   0xb   : > { %p1269_p3 = pnand %p752_p0, %p164_p2  ;;  %s202_s27 = sshll.u32 %s1204_s26, 4  ;;  %s1282_s27 = int_to_ptr.vmem [resolvable:$true] %s202_s27 }
   0xc   : > { %s189_s30 = sshll.u32 %s1205_s29, 4  ;;  %s1008_s6 = scalar_lea.vmem %s177_s23, 1024  ;;  %s1284_s30 = int_to_ptr.vmem [resolvable:$true] %s189_s30 }
   0xd   : > { %s1505_s25 = scalar_select %p1269_p3, 1, 0 }
   0xe   : > { %p902_p5 = pneg %p1269_p3  ;;  %p1009_p8 = scmp.ne.s32.totalorder %s177_s23, %s1008_s6 }
   0xf   : > { %p1016_p11 = scmp.lt.s32.totalorder %s177_s23, %s177_s23  ;;  %p1017_p12 = scmp.lt.s32.totalorder %s1008_s6, %s1008_s6 }
  0x10   : > { %p1278_p6 = pnand %p902_p5, %p1501_p1 }
  0x11   : > { %p1018_p13 = por %p1017_p12, %p1016_p11 }
  0x12   : > { %p999_p7 = pneg %p1278_p6 }
  0x14   : > { %p1011_p9 = pnand %p1009_p8, %p999_p7 }
  0x16   : > { %p1012_p10 = pneg %p1011_p9 }
  0x18   : > { %p1019_p0 = pnand %p1018_p13, %p1012_p10 }
  0x1a   : > { %1022 = shalt.err (!%p1019_p0)
}
  0x1b   : > { %s1206_s7 = smov 64   ;;  %s1207_s8 = smov 4  }
  0x1c   : > { %905 = dma.hbm_to_vmem [thread:$0]  (!%p1278_p6), %s1496_s1, 1024, %s177_s23, [#allocation6], %s1206_s7, %s1206_s7, %s1207_s8  }
  0x1d   : > { %s1034_s11 = scalar_lea.vmem %s1282_s27, 1024  ;;  %p1042_p9 = scmp.lt.s32.totalorder %s1282_s27, %s1282_s27 }
  0x1e   : > { %p1035_p2 = scmp.ne.s32.totalorder %s1282_s27, %s1034_s11  ;;  %p1043_p10 = scmp.lt.s32.totalorder %s1034_s11, %s1034_s11 }
  0x20   : > { %p1037_p5 = pnand %p1035_p2, %p999_p7  ;;  %p1044_p11 = por %p1043_p10, %p1042_p9 }
  0x22   : > { %p1038_p8 = pneg %p1037_p5 }
  0x24   : > { %p1045_p12 = pnand %p1044_p11, %p1038_p8 }
  0x26   : > { %1048 = shalt.err (!%p1045_p12)
}
  0x27   : > { %911 = dma.hbm_to_vmem [thread:$0]  (!%p1278_p6), %s1498_s3, 1024, %s1282_s27, [#allocation9], %s1206_s7, %s1206_s7, %s1207_s8  }
  0x28   : > { %s1060_s14 = scalar_lea.vmem %s1284_s30, 1024  ;;  %p1068_p5 = scmp.lt.s32.totalorder %s1284_s30, %s1284_s30 }
  0x29   : > { %p1061_p13 = scmp.ne.s32.totalorder %s1284_s30, %s1060_s14  ;;  %p1069_p8 = scmp.lt.s32.totalorder %s1060_s14, %s1060_s14 }
  0x2b   : > { %p1063_p0 = pnand %p1061_p13, %p999_p7  ;;  %p1070_p9 = por %p1069_p8, %p1068_p5 }
  0x2d   : > { %p1064_p2 = pneg %p1063_p0 }
  0x2f   : > { %p1071_p10 = pnand %p1070_p9, %p1064_p2 }
  0x31   : > { %1074 = shalt.err (!%p1071_p10)
}
  0x32   : > { %908 = dma.hbm_to_vmem [thread:$0]  (!%p1278_p6), %s1497_s2, 1024, %s1284_s30, [#allocation6], %s1206_s7, %s1206_s7, %s1207_s8  }
  0x33   : > { %s1208_s17 = smov [#allocation10]  }
  0x34   : > { %s216_s22 = sshll.u32 %s1208_s17, 4  ;;  %s217_s22 = int_to_ptr.vmem [resolvable:$true] %s216_s22 }
  0x35   : > { %s1086_s23 = scalar_lea.vmem %s217_s22, 128  ;;  %p1094_p0 = scmp.lt.s32.totalorder %s217_s22, %s217_s22 }
  0x36   : > { %p1087_p11 = scmp.ne.s32.totalorder %s217_s22, %s1086_s23  ;;  %p1095_p2 = scmp.lt.s32.totalorder %s1086_s23, %s1086_s23 }
  0x38   : > { %p1089_p12 = pnand %p1087_p11, %p999_p7  ;;  %p1096_p5 = por %p1095_p2, %p1094_p0 }
  0x3a   : > { %p1090_p13 = pneg %p1089_p12 }
  0x3c   : > { %p1097_p8 = pnand %p1096_p5, %p1090_p13 }
  0x3e   : > { %1100 = shalt.err (!%p1097_p8)
}
  0x3f   : > { %914 = dma.hbm_to_vmem [thread:$0]  (!%p1278_p6), %s1499_s4, 128, %s217_s22, [#allocation9]  }
  0x40   : > { %s751_s29 = sadd.s32 4294967294, %s1201_s21   ;;  %s1332_s28 = sadd.s32 1, %s1201_s21  }
  0x41   : > { %s27_s30 = ssub.s32 %s1201_s21, %s1332_s28  ;;  %s30_s6 = sadd.s32 1, %s1197_s20 }
  0x42   : > { %p28_p7 = scmp.eq.s32.totalorder %s27_s30, 0  ;;  %p37_p9 = scmp.ne.s32.totalorder %s1197_s20, %s1193_s19 }
  0x43   : > { %p38_p10 = scmp.eq.s32.totalorder %s1201_s21, 0  ;;  %p43_p11 = scmp.ne.s32.totalorder %s1193_s19, %s1189_s18 }
  0x44   : > { %s1343_s7 = scalar_select %p28_p7, %s1197_s20, %s30_s6  }
  0x45   : > { %p1345_p12 = por %p38_p10, %p37_p9  ;;  %p1351_p6 = por %p1501_p1, %p43_p11 }
  0x46   : > { %p151_p13 = scmp.eq.s32.totalorder %s1264_s24, 1  ;;  %p157_p0 = scmp.eq.s32.totalorder %s751_s29, 1 }
  0x47   : > { %s1508_s9 = scalar_select %p1351_p6, 1, 0 }
  0x48   : > { %p927_p2 = scmp.lt.s32.totalorder %s1201_s21, 2  ;;  %s227_s10 = sand.u32 1, %s1197_s20  }
  0x49   : > { %p1358_p5 = por %p151_p13, %p37_p9  ;;  %p1362_p8 = por %p157_p0, %p43_p11 }
  0x4a   : > { %s758_s13 = sshll.u32 %s227_s10, 3  ;;  %s759_s14 = sshll.u32 %s1201_s21, 7 }
  0x4b   : > { %s1509_s11 = scalar_select %p1358_p5, 1, 0 }
  0x4c   : > { %s1510_s12 = scalar_select %p1362_p8, 1, 0 }
  0x4d   : > { %s1370_s17 = scalar_lea.hbm %s1495_s0, %s759_s14  ;;  %s231_s22 = scalar_lea.vmem [#allocation2], %s758_s13 }
  0x4e   : > { %s238_s23 = sshll.u32 %s231_s22, 4  ;;  %p1374_p7 = pnand %p927_p2, %p1345_p12  ;;  %s239_s23 = int_to_ptr.vmem [resolvable:$true] %s238_s23 }
  0x4f   : > { %s228_s27 = scalar_lea.sflag [#allocation3], %s227_s10  ;;  %s1101_s29 = scalar_lea.hbm %s1370_s17, 128 }
  0x50   : > { %p1102_p9 = scmp.ne.s32.totalorder %s1370_s17, %s1101_s29  ;;  %p1103_p10 = pneg %p1374_p7 }
  0x51   : > { %s1106_s14 = scalar_lea.hbm %s1495_s0, 256  ;;  %p1107_p0 = scmp.lt.s32.totalorder %s1370_s17, %s1495_s0 }
  0x52   : > { %p1104_p11 = pnand %p1103_p10, %p1102_p9  ;;  %p1108_p12 = scmp.lt.s32.totalorder %s1106_s14, %s1101_s29 }
  0x54   : > { %p1105_p13 = pneg %p1104_p11  ;;  %p1109_p2 = por %p1108_p12, %p1107_p0 }
  0x56   : > { %p1110_p4 = pnand %p1109_p2, %p1105_p13 }
  0x58   : > { %1113 = shalt.err (!%p1110_p4)
}
  0x59   : > { %s1114_s8 = scalar_lea.vmem %s239_s23, 128  ;;  %s1209_s10 = smov [#allocation2]  }
  0x5a   : > { %p1115_p1 = scmp.ne.s32.totalorder %s239_s23, %s1114_s8  ;;  %s1119_s16 = sshll.u32 %s1209_s10, 4  ;;  %s1120_s16 = int_to_ptr.vmem [resolvable:$false] %s1119_s16 }
  0x5b   : > { %s1121_s22 = scalar_lea.vmem %s1120_s16, 256  ;;  %p1122_p9 = scmp.lt.s32.totalorder %s239_s23, %s1120_s16 }
  0x5c   : > { %p1117_p8 = pnand %p1115_p1, %p1103_p10  ;;  %p1123_p11 = scmp.lt.s32.totalorder %s1121_s22, %s1114_s8 }
  0x5e   : > { %p1118_p5 = pneg %p1117_p8  ;;  %p1124_p6 = por %p1123_p11, %p1122_p9 }
  0x60   : > { %p1125_p3 = pnand %p1124_p6, %p1118_p5 }
  0x62   : > { %1128 = shalt.err (!%p1125_p3)
}
  0x63   : > { %918 = dma.hbm_to_vmem [thread:$0]  (!%p1374_p7), %s1370_s17, 128, %s239_s23, %s228_s27  }
  0x64   : > { %p1512_p13 = scmp.ne.s32.totalorder %s1505_s25, 0 }
  0x65   : > { %s1395_s29 = sand.u32 (!%p1512_p13), 1, %s1193_s19   ;;  %p1513_p1 = scmp.ne.s32.totalorder (!%p1512_p13), %s1508_s9, 0 }
  0x66   : > { %247 = sbr.rel (%p1512_p13) target bundleno = 755 (0x2f3), region = 40  ;;  %s761_s30 = sshll.u32 (!%p1512_p13), %s1395_s29, 3 }
  0x67   : > { %s250_s6 = scalar_lea.sflag (!%p1512_p13), [#allocation3], %s1395_s29  ;;  %s1401_s14 = scalar_lea.vmem (!%p1512_p13), [#allocation2], %s761_s30 }
  0x6b   : > { %1172 = dma.done.wait (%p1513_p1), %s250_s6, 128  }
  0x6c   : > { %1174 = vsyncadd (%p1513_p1), %s250_s6, 4294967168  ;;  %p1514_p3 = scmp.eq.s32.totalorder %s1264_s24, 0 }
  0x6e   : > { %1176 = dma.done.wait (%p1514_p3), [#allocation6], 2048   ;;  %p1515_p4 = pmov %p1514_p3 }
  0x6f   : > { %p1516_p6 = pmov %p1514_p3 }
  0x70   : > { %1178 = vsyncadd (%p1515_p4), [#allocation6], 4294965248 }
  0x71   : > { %1180 = dma.done.wait (%p1516_p6), [#allocation9], 1152   ;;  %p1517_p5 = pmov %p1514_p3 }
  0x72   : > { %v1210_v0 = vmov 0.0   ;;  %vm1211_vm0 = vmmov 0   ;;  %v973_v1 = vld [vmem:[#allocation5 + $0x38] sm:$0xff]   ;;  %v974_v2 = vld [vmem:[#allocation5 + $0x30] sm:$0xff]   ;;  %v975_v3 = vld [vmem:[#allocation5 + $0x28] sm:$0xff]   ;;  %v316_v25 = vlaneseq  ;;  %s792_s25 = sshll.u32 %s1264_s24, 7 }
  0x73   : > { %1182 = vsyncadd (%p1517_p5), [#allocation9], 4294966144  ;;  %822 = vmatprep.subr.bf16.mxu0 %v1210_v0  ;;  %838 = vmatprep.mubr.msk.bf16.mxu0 %vm1211_vm0, %v1210_v0  ;;  %v981_v4 = vld [vmem:[#allocation7 + $0x38] sm:$0xff]   ;;  %v976_v5 = vld [vmem:[#allocation5 + $0x20] sm:$0xff]   ;;  %s295_s9 = scalar_lea.vmem [#allocation11], %s761_s30  ;;  %s1452_s27 = scalar_lea.hbm %s1500_s5, %s792_s25 }
  0x74   : > { %842 = vmatprep.subr.bf16.mxu1 %v1210_v0  ;;  %858 = vmatprep.mubr.msk.bf16.mxu1 %vm1211_vm0, %v1210_v0  ;;  %v982_v6 = vld [vmem:[#allocation7 + $0x30] sm:$0xff]   ;;  %v977_v7 = vld [vmem:[#allocation5 + $0x18] sm:$0xff]   ;;  %v983_v8 = vld [vmem:[#allocation7 + $0x28] sm:$0xff]   ;;  %v317_v26 = vshrl.u32 %v316_v25, 7  ;;  %s643_s17 = sshll.u32 %s295_s9, 4  ;;  %s630_s13 = scalar_lea.sflag [#allocation4], %s1395_s29  ;;  %s1454_s17 = int_to_ptr.vmem [resolvable:$true] %s643_s17 }
  0x75   : > { %823 = vmatpush3.bf16.msra.mxu0 %v973_v1  ;;  %843 = vmatpush3.bf16.msra.mxu1 %v981_v4  ;;  %v978_v9 = vld [vmem:[#allocation5 + $0x10] sm:$0xff]   ;;  %v984_v10 = vld [vmem:[#allocation7 + $0x20] sm:$0xff]   ;;  %v979_v11 = vld [vmem:[#allocation5 + $0x8] sm:$0xff]   ;;  %s1129_s24 = scalar_lea.vmem %s1454_s17, 128  ;;  %p1518_p7 = scmp.ne.s32.totalorder %s1509_s11, 0 }
  0x76   : > { %824 = vmatprep.subr.bf16.mxu0 %v1210_v0  ;;  %844 = vmatprep.subr.bf16.mxu1 %v1210_v0  ;;  %v985_v12 = vld [vmem:[#allocation7 + $0x18] sm:$0xff]   ;;  %v980_v13 = vld [vmem:[#allocation5] sm:$0xff]   ;;  %v986_v15 = vld [vmem:[#allocation7 + $0x10] sm:$0xff]   ;;  %v318_v27 = vsub.s32 0, %v317_v26  ;;  %v428_v39 = vsub.s32 1, %v317_v26  ;;  %v538_v48 = vsub.s32 2, %v317_v26  ;;  %p1130_p8 = scmp.ne.s32.totalorder %s1454_s17, %s1129_s24 }
  0x77   : > { %v297_v14 = vld [vmem:[%s1401_s14] sm:$0xff]  ;;  %v987_v17 = vld [vmem:[#allocation7 + $0x8] sm:$0xff]   ;;  %v988_v18 = vld [vmem:[#allocation7] sm:$0xff]   ;;  %s1212_s15 = smov [#allocation11]  }
  0x78   : > { %v299_v16 = vpack.c.bf16 %v297_v14, %v297_v14  ;;  %v989_v19 = vld [vmem:[#allocation8 + $0x38] sm:$0xff]   ;;  %v990_v20 = vld [vmem:[#allocation8 + $0x30] sm:$0xff]   ;;  %v991_v21 = vld [vmem:[#allocation8 + $0x28] sm:$0xff]   ;;  %p1131_p10 = pnand %p1130_p8, %p1518_p7  ;;  %s1133_s8 = sshll.u32 %s1212_s15, 4  ;;  %s1134_s8 = int_to_ptr.vmem [resolvable:$false] %s1133_s8 }
  0x79   : > { %825 = vmatpush3.bf16.msra.mxu0 %v974_v2  ;;  %845 = vmatpush3.bf16.msra.mxu1 %v982_v6  ;;  %v992_v22 = vld [vmem:[#allocation8 + $0x20] sm:$0xff]   ;;  %v993_v23 = vld [vmem:[#allocation8 + $0x18] sm:$0xff]   ;;  %v994_v24 = vld [vmem:[#allocation8 + $0x10] sm:$0xff]   ;;  %s1135_s10 = scalar_lea.vmem %s1134_s8, 256  ;;  %p1136_p12 = scmp.lt.s32.totalorder %s1454_s17, %s1134_s8 }
  0x7a   : > { %826 = vmatprep.subr.bf16.mxu0 %v1210_v0  ;;  %846 = vmatprep.subr.bf16.mxu1 %v1210_v0  ;;  %v298_v28 = vld [vmem:[#allocation10] sm:$0xff]  ;;  %v995_v37 = vld [vmem:[#allocation8 + $0x8] sm:$0xff]   ;;  %p1132_p0 = pneg %p1131_p10  ;;  %p1137_p2 = scmp.lt.s32.totalorder %s1135_s10, %s1129_s24 }
  0x7b   : > { %v319_v29 = vrot.slane %v298_v28, %v318_v27  ;;  %v996_v38 = vld [vmem:[#allocation8] sm:$0xff]   ;;  %v429_v40 = vrot.slane %v298_v28, %v428_v39  ;;  %v539_v49 = vrot.slane %v298_v28, %v538_v48 }
  0x7c   : > { %p1138_p9 = por %p1137_p2, %p1136_p12 }
  0x7d   : > { %827 = vmatpush3.bf16.msra.mxu0 %v975_v3  ;;  %847 = vmatpush3.bf16.msra.mxu1 %v983_v8 }
  0x7e   : > { %828 = vmatprep.subr.bf16.mxu0 %v1210_v0  ;;  %848 = vmatprep.subr.bf16.mxu1 %v1210_v0  ;;  %p1139_p11 = pnand %p1138_p9, %p1132_p0 }
  0x81   : > { %829 = vmatpush3.bf16.msra.mxu0 %v976_v5  ;;  %849 = vmatpush3.bf16.msra.mxu1 %v984_v10 }
  0x82   : > { %830 = vmatprep.subr.bf16.mxu0 %v1210_v0  ;;  %850 = vmatprep.subr.bf16.mxu1 %v1210_v0 }
  0x85   : > { %831 = vmatpush3.bf16.msra.mxu0 %v977_v7  ;;  %851 = vmatpush3.bf16.msra.mxu1 %v985_v12 }
  0x86   : > { %832 = vmatprep.subr.bf16.mxu0 %v1210_v0  ;;  %852 = vmatprep.subr.bf16.mxu1 %v1210_v0 }
  0x89   : > { %833 = vmatpush3.bf16.msra.mxu0 %v978_v9  ;;  %853 = vmatpush3.bf16.msra.mxu1 %v986_v15 }
  0x8a   : > { %834 = vmatprep.subr.bf16.mxu0 %v1210_v0  ;;  %854 = vmatprep.subr.bf16.mxu1 %v1210_v0 }
  0x8d   : > { %835 = vmatpush3.bf16.msra.mxu0 %v979_v11  ;;  %855 = vmatpush3.bf16.msra.mxu1 %v987_v17 }
  0x8e   : > { %836 = vmatprep.subr.bf16.mxu0 %v1210_v0  ;;  %856 = vmatprep.subr.bf16.mxu1 %v1210_v0 }
  0x91   : > { %837 = vmatpush3.bf16.msra.mxu0 %v980_v13  ;;  %857 = vmatpush3.bf16.msra.mxu1 %v988_v18 }
  0x92   : > { %862 = vmatprep.subr.bf16.mxu0 %v1210_v0 }
  0x94   : > { %839 = vmatmul.mubr.bf16.vlgmr.msra.gmra.mxu0 %v299_v16 }
  0x95   : > { %878 = vmatprep.mubr.msk.bf16.mxu0 %vm1211_vm0, %v1210_v0  ;;  %863 = vmatpush3.bf16.msra.mxu0 %v989_v19 }
  0x96   : > { %864 = vmatprep.subr.bf16.mxu0 %v1210_v0 }
  0x99   : > { %865 = vmatpush3.bf16.msra.mxu0 %v990_v20 }
  0x9a   : > { %866 = vmatprep.subr.bf16.mxu0 %v1210_v0 }
  0x9d   : > { %867 = vmatpush3.bf16.msra.mxu0 %v991_v21 }
  0x9e   : > { %868 = vmatprep.subr.bf16.mxu0 %v1210_v0 }
  0xa1   : > { %869 = vmatpush3.bf16.msra.mxu0 %v992_v22 }
  0xa2   : > { %870 = vmatprep.subr.bf16.mxu0 %v1210_v0 }
  0xa5   : > { %871 = vmatpush3.bf16.msra.mxu0 %v993_v23 }
  0xa6   : > { %872 = vmatprep.subr.bf16.mxu0 %v1210_v0 }
  0xa9   : > { %873 = vmatpush3.bf16.msra.mxu0 %v994_v24 }
  0xaa   : > { %874 = vmatprep.subr.bf16.mxu0 %v1210_v0 }
  0xad   : > { %875 = vmatpush3.bf16.msra.mxu0 %v995_v37 }
  0xae   : > { %876 = vmatprep.subr.bf16.mxu0 %v1210_v0 }
  0xb1   : > { %877 = vmatpush3.bf16.msra.mxu0 %v996_v38 }
 0x154   : > { %v402_v30 = vpop.f32.mrf.mxu0 }
 0x155   : > { %v403_v31 = vadd.f32 %v402_v30, %v319_v29 }
 0x156   : > { %v840_v32 = vpop.f32.mrf.mxu0 }
 0x157   : > { %v408_v33 = vmax.f32 %v403_v31, 0.0 }
 0x158   : > { %v405_v34 = vpop.f32.mrf.mxu0 }
 0x159   : > { %v409_v35 = vpack.c.bf16 %v408_v33, %v408_v33 }
 0x15a   : > { %v841_v36 = vpop.f32.mrf.mxu0 }
 0x15b   : > { %859 = vmatmul.mubr.bf16.vlgmr.msra.gmra.mxu1 %v409_v35 }
 0x21b   : > { %v512_v41 = vpop.f32.mrf.mxu1 }
 0x21c   : > { %v513_v42 = vadd.f32 %v512_v41, %v429_v40 }
 0x21d   : > { %v860_v43 = vpop.f32.mrf.mxu1 }
 0x21e   : > { %v518_v44 = vmax.f32 %v513_v42, 0.0 }
 0x21f   : > { %v515_v45 = vpop.f32.mrf.mxu1 }
 0x220   : > { %v519_v46 = vpack.c.bf16 %v518_v44, %v518_v44 }
 0x221   : > { %v861_v47 = vpop.f32.mrf.mxu1 }
 0x222   : > { %879 = vmatmul.mubr.bf16.vlgmr.msra.gmra.mxu0 %v519_v46 }
 0x2e2   : > { %v622_v50 = vpop.f32.mrf.mxu0 }
 0x2e3   : > { %v623_v51 = vadd.f32 %v622_v50, %v539_v49 }
 0x2e4   : > { %v880_v52 = vpop.f32.mrf.mxu0 }
 0x2e5   : > { %628 = vst [vmem:[%s295_s9] sm:$0xff] %v623_v51 }
 0x2e6   : > { %v625_v53 = vpop.f32.mrf.mxu0 }
 0x2e7   : > { %1142 = shalt.err (!%p1139_p11)
}
 0x2e8   : > { %s1143_s16 = scalar_lea.hbm %s1452_s27, 128  ;;  %s1147_s30 = scalar_lea.hbm %s1500_s5, 256 }
 0x2e9   : > { %p1144_p13 = scmp.ne.s32.totalorder %s1452_s27, %s1143_s16  ;;  %p1148_p4 = scmp.lt.s32.totalorder %s1452_s27, %s1500_s5 }
 0x2ea   : > { %p1149_p6 = scmp.lt.s32.totalorder %s1147_s30, %s1143_s16 }
 0x2eb   : > { %p1145_p1 = pnand %p1144_p13, %p1518_p7 }
 0x2ec   : > { %p1150_p5 = por %p1149_p6, %p1148_p4 }
 0x2ed   : > { %p1146_p3 = pneg %p1145_p1 }
 0x2ef   : > { %p1151_p8 = pnand %p1150_p5, %p1146_p3 }
 0x2f1   : > { %1154 = shalt.err (!%p1151_p8)
}
 0x2f2   : > { %900 = dma.vmem_to_hbm [thread:$0]  (%p1518_p7), %s1454_s17, 128, %s1452_s27, %s630_s13   ;;  %v881_v54 = vpop.f32.mrf.mxu0 }
 0x2f3 PF: > { %s655_s25 = sand.u32 1, %s1189_s18   ;;  %p1519_p10 = scmp.ne.s32.totalorder %s1510_s12, 0 }
 0x2f4   : > { %p1520_p0 = scmp.ge.s32.totalorder %s1201_s21, 2  ;;  %s656_s9 = scalar_lea.sflag [#allocation4], %s655_s25 }
 0x2f6   : > { %p920_p12 = pnand %p1520_p0, %p1519_p10 }
 0x2f8   : > { %p921_p2 = pneg %p920_p12 }
 0x2fa   : > { %1184 = dma.done.wait (%p921_p2), %s656_s9, 128  }
 0x2fb   : > { %1186 = vsyncadd (%p921_p2), %s656_s9, 4294967168  ;;  %p20_p9 = scmp.ge.s32.totalorder %s1332_s28, 4   ;;  %s1521_s18 = smov %s1193_s19 }
 0x2fc   : > { %s1522_s19 = smov %s1197_s20  ;;  %s1523_s20 = smov %s1343_s7 }
 0x2fd   : > { %s1524_s21 = smov %s1332_s28  ;;  %22 = sbr.rel (!%p20_p9) target bundleno = 7 (0x7), region = 101 }
 0x302   :  { %661 = vsyncpa [#allocation3], 1 }
 0x303   :  { %663 = vsyncpa [#allocation3 + $0x1], 1 }
 0x304   :  { %664 = vsyncpa [#allocation6], 1 }
 0x305   :  { %665 = vsyncpa [#allocation9], 1 }
 0x306   :  { %666 = vsyncpa [#allocation4], 1 }
 0x307   :  { %668 = vsyncpa [#allocation4 + $0x1], 1 }

</bundles_post_ra>
